<compile_context>
chip_gen: v6e
topology: v6e:2x2x1
jax: 0.10.0
libtpu: 0.0.40
codegen_flags: <defaults>
</compile_context>

<pallas_src>
import jax
import jax.numpy as jnp
from jax.experimental import pallas as pl
from jax.experimental.pallas import tpu as pltpu


def _leaky_relu(x, slope=0.2):
    return jnp.where(x > 0, x, slope * x)


def disc_kernel(x_ref, w1_ref, b1_ref, w2_ref, b2_ref, w3_ref, b3_ref, o_ref):
    # Layer 1: bf16 matmul on MXU (f32 accumulate), f32 bias + LeakyReLU(0.2)
    h = jnp.dot(x_ref[...], w1_ref[...], preferred_element_type=jnp.float32)
    h = _leaky_relu(h + b1_ref[...])
    # Layer 2
    h = jnp.dot(h.astype(jnp.bfloat16), w2_ref[...],
                preferred_element_type=jnp.float32)
    h = _leaky_relu(h + b2_ref[...])
    # Layer 3
    h = jnp.dot(h.astype(jnp.bfloat16), w3_ref[...],
                preferred_element_type=jnp.float32)
    h = _leaky_relu(h + b3_ref[...])
    # Sigmoid: exp and approx reciprocal both execute on the EUP slot.
    e = jnp.exp(-h)
    o_ref[...] = pl.reciprocal(1.0 + e, approx=True)


def _round_up(n, m):
    return ((n + m - 1) // m) * m


def discriminator_forward(x, params, *, batch_tile=None):
    """x: [B, inC] float32.

    params: dict with w1,b1,w2,b2,w3,b3; weights are [in, out] (already
    transposed vs. PyTorch's [out, in]), biases are [1, out].
    """
    B, in_c = x.shape
    h1 = params["w1"].shape[1]
    h2 = params["w2"].shape[1]
    out_c = params["w3"].shape[1]

    # --- pad feature dims to multiples of 128: lane-dense loads/stores,
    #     full MXU depth, no masked vst on the output.
    in_p = _round_up(in_c, 128)
    h1_p = _round_up(h1, 128)
    h2_p = _round_up(h2, 128)
    out_p = _round_up(out_c, 128)

    # --- auto batch tile: multiple of 8, <=512, bounded by a conservative
    #     VMEM budget (double-buffered bf16 x tile + double-buffered f32 out
    #     tile + the largest f32 intermediate), safe under the 32 MiB scoped
    #     default on every generation (incl. v7x's 64 MiB physical VMEM).
    if batch_tile is None:
        budget = 16 * 1024 * 1024
        per_row = 2 * (in_p * 2) + 2 * (out_p * 4) + 4 * max(h1_p, h2_p, out_p)
        cap = max(8, (budget // per_row) // 8 * 8)
        batch_tile = int(min(512, cap, _round_up(B, 8)))
    batch_tile = max(8, (int(batch_tile) // 8) * 8)

    # --- pad batch so any B works (no divisibility requirement)
    B_p = _round_up(B, batch_tile)

    # --- cast/pad operands at the pallas_call boundary (zero padding keeps
    #     the extra rows/cols finite; they are stripped after the call).
    xb = jnp.zeros((B_p, in_p), jnp.bfloat16).at[:B, :in_c].set(
        x.astype(jnp.bfloat16))

    def pad_w(w, r, c):
        return jnp.zeros((r, c), jnp.bfloat16).at[:w.shape[0], :w.shape[1]].set(
            w.astype(jnp.bfloat16))

    def pad_b(b, c):
        return jnp.zeros((1, c), jnp.float32).at[:, :b.shape[1]].set(
            b.astype(jnp.float32))

    w1 = pad_w(params["w1"], in_p, h1_p)
    b1 = pad_b(params["b1"], h1_p)
    w2 = pad_w(params["w2"], h1_p, h2_p)
    b2 = pad_b(params["b2"], h2_p)
    w3 = pad_w(params["w3"], h2_p, out_p)
    b3 = pad_b(params["b3"], out_p)

    grid = (B_p // batch_tile,)

    def resident(shape):
        # Full-array block; constant block index -> stays VMEM-resident across
        # grid steps (no re-DMA per batch tile).
        # TODO(synk): pipeline_mode=pl.Buffered(1) would drop the redundant
        # second buffer; left at the default since the weights are tiny.
        n = len(shape)
        return pl.BlockSpec(shape, lambda i, _n=n: (0,) * _n)

    weight_bytes = (2 * (in_p * h1_p + h1_p * h2_p + h2_p * out_p)
                    + 4 * (h1_p + h2_p + out_p))
    cost = pl.CostEstimate(
        flops=2 * B_p * (in_p * h1_p + h1_p * h2_p + h2_p * out_p),
        transcendentals=2 * B_p * out_p,           # exp + reciprocal
        bytes_accessed=2 * B_p * in_p + 4 * B_p * out_p + weight_bytes,
    )

    out = pl.pallas_call(
        disc_kernel,
        out_shape=jax.ShapeDtypeStruct((B_p, out_p), jnp.float32),
        grid_spec=pltpu.PrefetchScalarGridSpec(
            num_scalar_prefetch=0,
            grid=grid,
            in_specs=[
                pl.BlockSpec((batch_tile, in_p), lambda i: (i, 0)),  # x tile
                resident((in_p, h1_p)), resident((1, h1_p)),
                resident((h1_p, h2_p)), resident((1, h2_p)),
                resident((h2_p, out_p)), resident((1, out_p)),
            ],
            out_specs=pl.BlockSpec((batch_tile, out_p), lambda i: (i, 0)),
        ),
        compiler_params=pltpu.CompilerParams(
            dimension_semantics=("parallel",),
            vmem_limit_bytes=32 * 1024 * 1024,
        ),
        cost_estimate=cost,
    )(xb, w1, b1, w2, b2, w3, b3)

    # strip batch / feature padding
    return out[:B, :out_c]


def init_params(key, in_c, out_c):
    """Deterministic init mimicking nn.Linear default U(-1/sqrt(fan_in), ...)."""
    h1 = out_c * 16
    h2 = out_c * 2
    dims = [(in_c, h1), (h1, h2), (h2, out_c)]
    params = {}
    keys = jax.random.split(key, 2 * len(dims))
    for n, (fin, fout) in enumerate(dims):
        bound = 1.0 / (fin ** 0.5)
        params[f"w{n+1}"] = jax.random.uniform(
            keys[2 * n], (fin, fout), jnp.float32, minval=-bound, maxval=bound)
        params[f"b{n+1}"] = jax.random.uniform(
            keys[2 * n + 1], (1, fout), jnp.float32, minval=-bound, maxval=bound)
    return params


def reference_forward(x, params):
    h = x @ params["w1"] + params["b1"]
    h = jnp.where(h > 0, h, 0.2 * h)
    h = h @ params["w2"] + params["b2"]
    h = jnp.where(h > 0, h, 0.2 * h)
    h = h @ params["w3"] + params["b3"]
    h = jnp.where(h > 0, h, 0.2 * h)
    return jax.nn.sigmoid(h)


if __name__ == "__main__":
    # Small synthetic DataInfo: discriminatorIn=32, discriminatorOut=8
    IN_C, OUT_C = 32, 8

    key = jax.random.PRNGKey(0)
    k_x1, k_x2, k_p = jax.random.split(key, 3)
    params = init_params(k_p, IN_C, OUT_C)

    # Case 1: batch multiple of 8
    B1 = 8
    x1 = jax.random.normal(k_x1, (B1, IN_C), jnp.float32)
    out1 = jax.block_until_ready(discriminator_forward(x1, params))
    ref1 = reference_forward(x1, params)
    assert out1.shape == (B1, OUT_C)
    assert jnp.allclose(out1, ref1, atol=2e-2, rtol=2e-2), "mismatch (B=8)"

    # Case 2: ragged batch (exercises batch-padding path)
    B2 = 6
    x2 = jax.random.normal(k_x2, (B2, IN_C), jnp.float32)
    out2 = jax.block_until_ready(discriminator_forward(x2, params))
    ref2 = reference_forward(x2, params)
    assert out2.shape == (B2, OUT_C)
    assert jnp.allclose(out2, ref2, atol=2e-2, rtol=2e-2), "mismatch (B=6)"

    print("KERNEL_OK")
</pallas_src>

<mosaic_0001>
module attributes {stable_mosaic.version = 11 : i64} {
  func.func @disc_kernel(%arg0: i32, %arg1: memref<8x128xbf16, #tpu.memory_space<vmem>>, %arg2: memref<128x128xbf16, #tpu.memory_space<vmem>>, %arg3: memref<1x128xf32, #tpu.memory_space<vmem>>, %arg4: memref<128x128xbf16, #tpu.memory_space<vmem>>, %arg5: memref<1x128xf32, #tpu.memory_space<vmem>>, %arg6: memref<128x128xbf16, #tpu.memory_space<vmem>>, %arg7: memref<1x128xf32, #tpu.memory_space<vmem>>, %arg8: memref<8x128xf32, #tpu.memory_space<vmem>>) attributes {dimension_semantics = [#tpu.dimension_semantics<parallel>], iteration_bounds = array<i64: 1>, scalar_prefetch = 0 : i64, scratch_operands = 0 : i64, tpu.core_type = #tpu.core_type<tc>, window_params = [{transform_indices = @transform_0, window_bounds = array<i64: 8, 128>}, {pipeline_mode = #tpu.pipeline_mode<synchronous>, transform_indices = @transform_1, window_bounds = array<i64: 128, 128>}, {pipeline_mode = #tpu.pipeline_mode<synchronous>, transform_indices = @transform_2, window_bounds = array<i64: 1, 128>}, {pipeline_mode = #tpu.pipeline_mode<synchronous>, transform_indices = @transform_3, window_bounds = array<i64: 128, 128>}, {pipeline_mode = #tpu.pipeline_mode<synchronous>, transform_indices = @transform_4, window_bounds = array<i64: 1, 128>}, {pipeline_mode = #tpu.pipeline_mode<synchronous>, transform_indices = @transform_5, window_bounds = array<i64: 128, 128>}, {pipeline_mode = #tpu.pipeline_mode<synchronous>, transform_indices = @transform_6, window_bounds = array<i64: 1, 128>}, {transform_indices = @transform_7, window_bounds = array<i64: 8, 128>}]} {
    %c0 = arith.constant 0 : index
    %c0_0 = arith.constant 0 : index
    %0 = vector.load %arg1[%c0, %c0_0] : memref<8x128xbf16, #tpu.memory_space<vmem>>, vector<8x128xbf16>
    %c0_1 = arith.constant 0 : index
    %c0_2 = arith.constant 0 : index
    %1 = vector.load %arg2[%c0_1, %c0_2] : memref<128x128xbf16, #tpu.memory_space<vmem>>, vector<128x128xbf16>
    %cst = arith.constant dense<0.000000e+00> : vector<8x128xf32>
    %2 = tpu.matmul %0, %1, %cst {dimension_numbers = #tpu.dot_dimension_numbers<[1], [0], [0], [1], [0, 0, 1, 1], [], []>} : vector<8x128xbf16>, vector<128x128xbf16>, vector<8x128xf32> -> vector<8x128xf32>
    %c0_3 = arith.constant 0 : index
    %c0_4 = arith.constant 0 : index
    %3 = vector.load %arg3[%c0_3, %c0_4] : memref<1x128xf32, #tpu.memory_space<vmem>>, vector<1x128xf32>
    %4 = vector.broadcast %3 : vector<1x128xf32> to vector<8x128xf32>
    %5 = arith.addf %2, %4 : vector<8x128xf32>
    %cst_5 = arith.constant 0.000000e+00 : f32
    %6 = vector.broadcast %cst_5 : f32 to vector<8x128xf32>
    %7 = arith.cmpf ogt, %5, %6 : vector<8x128xf32>
    %cst_6 = arith.constant 2.000000e-01 : f32
    %8 = vector.broadcast %cst_6 : f32 to vector<8x128xf32>
    %9 = arith.mulf %8, %5 : vector<8x128xf32>
    %10 = arith.select %7, %5, %9 : vector<8x128xi1>, vector<8x128xf32>
    %11 = arith.truncf %10 : vector<8x128xf32> to vector<8x128xbf16>
    %c0_7 = arith.constant 0 : index
    %c0_8 = arith.constant 0 : index
    %12 = vector.load %arg4[%c0_7, %c0_8] : memref<128x128xbf16, #tpu.memory_space<vmem>>, vector<128x128xbf16>
    %cst_9 = arith.constant dense<0.000000e+00> : vector<8x128xf32>
    %13 = tpu.matmul %11, %12, %cst_9 {dimension_numbers = #tpu.dot_dimension_numbers<[1], [0], [0], [1], [0, 0, 1, 1], [], []>} : vector<8x128xbf16>, vector<128x128xbf16>, vector<8x128xf32> -> vector<8x128xf32>
    %c0_10 = arith.constant 0 : index
    %c0_11 = arith.constant 0 : index
    %14 = vector.load %arg5[%c0_10, %c0_11] : memref<1x128xf32, #tpu.memory_space<vmem>>, vector<1x128xf32>
    %15 = vector.broadcast %14 : vector<1x128xf32> to vector<8x128xf32>
    %16 = arith.addf %13, %15 : vector<8x128xf32>
    %cst_12 = arith.constant 0.000000e+00 : f32
    %17 = vector.broadcast %cst_12 : f32 to vector<8x128xf32>
    %18 = arith.cmpf ogt, %16, %17 : vector<8x128xf32>
    %cst_13 = arith.constant 2.000000e-01 : f32
    %19 = vector.broadcast %cst_13 : f32 to vector<8x128xf32>
    %20 = arith.mulf %19, %16 : vector<8x128xf32>
    %21 = arith.select %18, %16, %20 : vector<8x128xi1>, vector<8x128xf32>
    %22 = arith.truncf %21 : vector<8x128xf32> to vector<8x128xbf16>
    %c0_14 = arith.constant 0 : index
    %c0_15 = arith.constant 0 : index
    %23 = vector.load %arg6[%c0_14, %c0_15] : memref<128x128xbf16, #tpu.memory_space<vmem>>, vector<128x128xbf16>
    %cst_16 = arith.constant dense<0.000000e+00> : vector<8x128xf32>
    %24 = tpu.matmul %22, %23, %cst_16 {dimension_numbers = #tpu.dot_dimension_numbers<[1], [0], [0], [1], [0, 0, 1, 1], [], []>} : vector<8x128xbf16>, vector<128x128xbf16>, vector<8x128xf32> -> vector<8x128xf32>
    %c0_17 = arith.constant 0 : index
    %c0_18 = arith.constant 0 : index
    %25 = vector.load %arg7[%c0_17, %c0_18] : memref<1x128xf32, #tpu.memory_space<vmem>>, vector<1x128xf32>
    %26 = vector.broadcast %25 : vector<1x128xf32> to vector<8x128xf32>
    %27 = arith.addf %24, %26 : vector<8x128xf32>
    %cst_19 = arith.constant 0.000000e+00 : f32
    %28 = vector.broadcast %cst_19 : f32 to vector<8x128xf32>
    %29 = arith.cmpf ogt, %27, %28 : vector<8x128xf32>
    %cst_20 = arith.constant 2.000000e-01 : f32
    %30 = vector.broadcast %cst_20 : f32 to vector<8x128xf32>
    %31 = arith.mulf %30, %27 : vector<8x128xf32>
    %32 = arith.select %29, %27, %31 : vector<8x128xi1>, vector<8x128xf32>
    %cst_21 = arith.constant 0.000000e+00 : f32
    %33 = vector.broadcast %cst_21 : f32 to vector<8x128xf32>
    %34 = arith.subf %33, %32 : vector<8x128xf32>
    %35 = math.exp %34 : vector<8x128xf32>
    %cst_22 = arith.constant 1.000000e+00 : f32
    %36 = vector.broadcast %cst_22 : f32 to vector<8x128xf32>
    %37 = arith.addf %36, %35 : vector<8x128xf32>
    %38 = tpu.reciprocal %37 {approx = true} : vector<8x128xf32> -> vector<8x128xf32>
    %c0_23 = arith.constant 0 : index
    %c0_24 = arith.constant 0 : index
    %39 = vector.load %arg8[%c0_23, %c0_24] : memref<8x128xf32, #tpu.memory_space<vmem>>, vector<8x128xf32>
    tpu.vector_store %arg8[%c0_23, %c0_24], %38 {strides = array<i32>} : memref<8x128xf32, #tpu.memory_space<vmem>>, vector<8x128xf32>,
    return
  }
  func.func @transform_0(%arg0: i32) -> (i32, i32) {
    %c0_i32 = arith.constant 0 : i32
    %c0_i32_0 = arith.constant 0 : i32
    return %arg0, %c0_i32 : i32, i32
  }
  func.func @transform_1(%arg0: i32) -> (i32, i32) {
    %c0_i32 = arith.constant 0 : i32
    %c0_i32_0 = arith.constant 0 : i32
    %c0_i32_1 = arith.constant 0 : i32
    return %c0_i32, %c0_i32_0 : i32, i32
  }
  func.func @transform_2(%arg0: i32) -> (i32, i32) {
    %c0_i32 = arith.constant 0 : i32
    %c0_i32_0 = arith.constant 0 : i32
    %c0_i32_1 = arith.constant 0 : i32
    return %c0_i32, %c0_i32_0 : i32, i32
  }
  func.func @transform_3(%arg0: i32) -> (i32, i32) {
    %c0_i32 = arith.constant 0 : i32
    %c0_i32_0 = arith.constant 0 : i32
    %c0_i32_1 = arith.constant 0 : i32
    return %c0_i32, %c0_i32_0 : i32, i32
  }
  func.func @transform_4(%arg0: i32) -> (i32, i32) {
    %c0_i32 = arith.constant 0 : i32
    %c0_i32_0 = arith.constant 0 : i32
    %c0_i32_1 = arith.constant 0 : i32
    return %c0_i32, %c0_i32_0 : i32, i32
  }
  func.func @transform_5(%arg0: i32) -> (i32, i32) {
    %c0_i32 = arith.constant 0 : i32
    %c0_i32_0 = arith.constant 0 : i32
    %c0_i32_1 = arith.constant 0 : i32
    return %c0_i32, %c0_i32_0 : i32, i32
  }
  func.func @transform_6(%arg0: i32) -> (i32, i32) {
    %c0_i32 = arith.constant 0 : i32
    %c0_i32_0 = arith.constant 0 : i32
    %c0_i32_1 = arith.constant 0 : i32
    return %c0_i32, %c0_i32_0 : i32, i32
  }
  func.func @transform_7(%arg0: i32) -> (i32, i32) {
    %c0_i32 = arith.constant 0 : i32
    %c0_i32_0 = arith.constant 0 : i32
    return %arg0, %c0_i32 : i32, i32
  }
}

</mosaic_0001>

<bundles_post_ra>
// kernel: tpu_custom_call.1
= control target key start
LH: loop header
LB: loop body
LE: loop exit
PB: predicated region body
PF: predicated region fallthrough
CT: control target
= control target key end

     0   :  { %12 = vsyncpa [#allocation3], 0  ;;  %s820_s0 = inlined_call_operand.hbm [shape: bf16[8,128], index: 0, kind: input, shape index: {}]   ;;  %s821_s1 = inlined_call_operand.hbm [shape: bf16[128,128], index: 1, kind: input, shape index: {}]   ;;  %s822_s2 = inlined_call_operand.vmem [shape: f32[1,128], index: 2, kind: input, shape index: {}]   ;;  %s823_s3 = inlined_call_operand.hbm [shape: bf16[128,128], index: 3, kind: input, shape index: {}]   ;;  %s824_s4 = inlined_call_operand.vmem [shape: f32[1,128], index: 4, kind: input, shape index: {}]   ;;  %s825_s5 = inlined_call_operand.hbm [shape: bf16[128,128], index: 5, kind: input, shape index: {}]   ;;  %s826_s6 = inlined_call_operand.vmem [shape: f32[1,128], index: 6, kind: input, shape index: {}]   ;;  %s827_s7 = inlined_call_operand.hbm [shape: f32[8,128], index: 7, kind: output, shape index: {}]  }
   0x1   :  { %13 = vsyncpa [#allocation6], 0 }
   0x2   :  { %14 = vsyncpa [#allocation9], 0 }
   0x3   :  { %15 = vsyncpa [#allocation4], 0  ;;  %s708_s24 = smov [#allocation5]  }
   0x4   :  { %s31_s25 = sshll.u32 %s708_s24, 4  ;;  %s32_s25 = int_to_ptr.vmem [resolvable:$true] %s31_s25 }
   0x5   :  { %s608_s26 = scalar_lea.vmem %s32_s25, 1024  ;;  %p613_p1 = scmp.lt.s32.totalorder %s32_s25, %s32_s25 }
   0x6   :  { %p609_p0 = scmp.ne.s32.totalorder %s32_s25, %s608_s26  ;;  %p614_p2 = scmp.lt.s32.totalorder %s608_s26, %s608_s26 }
   0x8   :  { %p615_p3 = por %p614_p2, %p613_p1 }
   0xa   :  { %p616_p4 = pnand %p615_p3, %p609_p0 }
   0xc   :  { %619 = shalt.err (!%p616_p4)
}
   0xd   :  { %s709_s27 = smov 64   ;;  %s710_s28 = smov 4  }
   0xe   :  { %37 = dma.hbm_to_vmem [thread:$0]  %s821_s1, 1024, %s32_s25, [#allocation6], %s709_s27, %s709_s27, %s710_s28  }
   0xf   :  { %s711_s8 = smov [#allocation2]   ;;  %s712_s10 = smov [#allocation7]  }
  0x10   :  { %s22_s9 = sshll.u32 %s711_s8, 4  ;;  %s45_s11 = sshll.u32 %s712_s10, 4  ;;  %s23_s9 = int_to_ptr.vmem [resolvable:$true] %s22_s9  ;;  %s46_s11 = int_to_ptr.vmem [resolvable:$true] %s45_s11 }
  0x11   :  { %s628_s12 = scalar_lea.vmem %s23_s9, 64  ;;  %p633_p6 = scmp.lt.s32.totalorder %s23_s9, %s23_s9 }
  0x12   :  { %p629_p5 = scmp.ne.s32.totalorder %s23_s9, %s628_s12  ;;  %p634_p7 = scmp.lt.s32.totalorder %s628_s12, %s628_s12 }
  0x14   :  { %p635_p8 = por %p634_p7, %p633_p6 }
  0x16   :  { %p636_p9 = pnand %p635_p8, %p629_p5 }
  0x18   :  { %639 = shalt.err (!%p636_p9)
}
  0x19   :  { %25 = dma.hbm_to_vmem [thread:$0]  %s820_s0, 64, %s23_s9, [#allocation3]  }
  0x1a   :  { %s648_s15 = scalar_lea.vmem %s46_s11, 1024  ;;  %p653_p11 = scmp.lt.s32.totalorder %s46_s11, %s46_s11 }
  0x1b   :  { %p649_p10 = scmp.ne.s32.totalorder %s46_s11, %s648_s15  ;;  %p654_p12 = scmp.lt.s32.totalorder %s648_s15, %s648_s15 }
  0x1d   :  { %p655_p13 = por %p654_p12, %p653_p11 }
  0x1f   :  { %p656_p0 = pnand %p655_p13, %p649_p10 }
  0x21   :  { %659 = shalt.err (!%p656_p0)
}
  0x22   :  { %51 = dma.hbm_to_vmem [thread:$0]  %s823_s3, 1024, %s46_s11, [#allocation6], %s709_s27, %s709_s27, %s710_s28  }
  0x23   :  { %s713_s17 = smov [#allocation8]  }
  0x24   :  { %s59_s18 = sshll.u32 %s713_s17, 4  ;;  %s60_s18 = int_to_ptr.vmem [resolvable:$true] %s59_s18 }
  0x25   :  { %s668_s19 = scalar_lea.vmem %s60_s18, 1024  ;;  %p673_p2 = scmp.lt.s32.totalorder %s60_s18, %s60_s18 }
  0x26   :  { %p669_p1 = scmp.ne.s32.totalorder %s60_s18, %s668_s19  ;;  %p674_p3 = scmp.lt.s32.totalorder %s668_s19, %s668_s19 }
  0x28   :  { %p675_p4 = por %p674_p3, %p673_p2 }
  0x2a   :  { %p676_p5 = pnand %p675_p4, %p669_p1 }
  0x2c   :  { %679 = shalt.err (!%p676_p5)
}
  0x2d   :  { %65 = dma.hbm_to_vmem [thread:$0]  %s825_s5, 1024, %s60_s18, [#allocation9], %s709_s27, %s709_s27, %s710_s28  }
  0x2e   :  { %700 = dma.done.wait [#allocation3], 64  }
  0x2f   :  { %701 = vsyncadd [#allocation3], 4294967232 }
  0x30   :  { %702 = dma.done.wait [#allocation6], 2048  }
  0x31   :  { %703 = vsyncadd [#allocation6], 4294965248 }
  0x32   :  { %704 = dma.done.wait [#allocation9], 1024  }
  0x33   :  { %705 = vsyncadd [#allocation9], 4294966272  ;;  %v714_v0 = vmov 0.0   ;;  %vm715_vm0 = vmmov 0   ;;  %v572_v1 = vld [vmem:[#allocation5 + $0x38] sm:$0xff]   ;;  %v573_v2 = vld [vmem:[#allocation5 + $0x30] sm:$0xff]  }
  0x34   :  { %503 = vmatprep.subr.bf16.mxu0 %v714_v0  ;;  %519 = vmatprep.mubr.msk.bf16.mxu0 %vm715_vm0, %v714_v0  ;;  %v574_v3 = vld [vmem:[#allocation5 + $0x28] sm:$0xff]   ;;  %v580_v4 = vld [vmem:[#allocation7 + $0x38] sm:$0xff]   ;;  %v575_v5 = vld [vmem:[#allocation5 + $0x20] sm:$0xff]  }
  0x35   :  { %523 = vmatprep.subr.bf16.mxu1 %v714_v0  ;;  %539 = vmatprep.mubr.msk.bf16.mxu1 %vm715_vm0, %v714_v0  ;;  %v581_v6 = vld [vmem:[#allocation7 + $0x30] sm:$0xff]   ;;  %v576_v7 = vld [vmem:[#allocation5 + $0x18] sm:$0xff]   ;;  %v582_v8 = vld [vmem:[#allocation7 + $0x28] sm:$0xff]  }
  0x36   :  { %504 = vmatpush3.bf16.msra.mxu0 %v572_v1  ;;  %524 = vmatpush3.bf16.msra.mxu1 %v580_v4  ;;  %v577_v9 = vld [vmem:[#allocation5 + $0x10] sm:$0xff]   ;;  %v583_v10 = vld [vmem:[#allocation7 + $0x20] sm:$0xff]   ;;  %v578_v11 = vld [vmem:[#allocation5 + $0x8] sm:$0xff]  }
  0x37   :  { %505 = vmatprep.subr.bf16.mxu0 %v714_v0  ;;  %525 = vmatprep.subr.bf16.mxu1 %v714_v0  ;;  %v584_v12 = vld [vmem:[#allocation7 + $0x18] sm:$0xff]   ;;  %v579_v13 = vld [vmem:[#allocation5] sm:$0xff]   ;;  %v585_v14 = vld [vmem:[#allocation7 + $0x10] sm:$0xff]  }
  0x38   :  { %v81_v15 = vld [vmem:[#allocation2] sm:$0xf]  ;;  %v586_v16 = vld [vmem:[#allocation7 + $0x8] sm:$0xff]   ;;  %v587_v17 = vld [vmem:[#allocation7] sm:$0xff]  }
  0x39   :  { %v588_v18 = vld [vmem:[#allocation8 + $0x38] sm:$0xff]   ;;  %v589_v19 = vld [vmem:[#allocation8 + $0x30] sm:$0xff]   ;;  %v590_v20 = vld [vmem:[#allocation8 + $0x28] sm:$0xff]  }
  0x3a   :  { %506 = vmatpush3.bf16.msra.mxu0 %v573_v2  ;;  %526 = vmatpush3.bf16.msra.mxu1 %v581_v6  ;;  %v591_v21 = vld [vmem:[#allocation8 + $0x20] sm:$0xff]   ;;  %v592_v22 = vld [vmem:[#allocation8 + $0x18] sm:$0xff]   ;;  %v593_v23 = vld [vmem:[#allocation8 + $0x10] sm:$0xff]  }
  0x3b   :  { %507 = vmatprep.subr.bf16.mxu0 %v714_v0  ;;  %527 = vmatprep.subr.bf16.mxu1 %v714_v0  ;;  %v449_v24 = vld [vmem:[%s822_s2] ss:$0 sm:$0xff]  ;;  %v594_v33 = vld [vmem:[#allocation8 + $0x8] sm:$0xff]   ;;  %v595_v34 = vld [vmem:[#allocation8] sm:$0xff]  }
  0x3c   :  { %v458_v35 = vld [vmem:[%s824_s4] ss:$0 sm:$0xff]  ;;  %s716_s4 = smov [#allocation10]  }
  0x3d   :  { %v467_v44 = vld [vmem:[%s826_s6] ss:$0 sm:$0xff]  ;;  %s438_s24 = sshll.u32 %s716_s4, 4  ;;  %s439_s24 = int_to_ptr.vmem [resolvable:$true] %s438_s24 }
  0x3e   :  { %508 = vmatpush3.bf16.msra.mxu0 %v574_v3  ;;  %528 = vmatpush3.bf16.msra.mxu1 %v582_v8  ;;  %s680_s6 = scalar_lea.vmem %s439_s24, 128  ;;  %p685_p7 = scmp.lt.s32.totalorder %s439_s24, %s439_s24 }
  0x3f   :  { %509 = vmatprep.subr.bf16.mxu0 %v714_v0  ;;  %529 = vmatprep.subr.bf16.mxu1 %v714_v0  ;;  %p681_p6 = scmp.ne.s32.totalorder %s439_s24, %s680_s6  ;;  %p686_p8 = scmp.lt.s32.totalorder %s680_s6, %s680_s6 }
  0x41   :  { %p687_p9 = por %p686_p8, %p685_p7 }
  0x42   :  { %510 = vmatpush3.bf16.msra.mxu0 %v575_v5  ;;  %530 = vmatpush3.bf16.msra.mxu1 %v583_v10 }
  0x43   :  { %511 = vmatprep.subr.bf16.mxu0 %v714_v0  ;;  %531 = vmatprep.subr.bf16.mxu1 %v714_v0  ;;  %p688_p10 = pnand %p687_p9, %p681_p6 }
  0x46   :  { %512 = vmatpush3.bf16.msra.mxu0 %v576_v7  ;;  %532 = vmatpush3.bf16.msra.mxu1 %v584_v12 }
  0x47   :  { %513 = vmatprep.subr.bf16.mxu0 %v714_v0  ;;  %533 = vmatprep.subr.bf16.mxu1 %v714_v0 }
  0x4a   :  { %514 = vmatpush3.bf16.msra.mxu0 %v577_v9  ;;  %534 = vmatpush3.bf16.msra.mxu1 %v585_v14 }
  0x4b   :  { %515 = vmatprep.subr.bf16.mxu0 %v714_v0  ;;  %535 = vmatprep.subr.bf16.mxu1 %v714_v0 }
  0x4e   :  { %516 = vmatpush3.bf16.msra.mxu0 %v578_v11  ;;  %536 = vmatpush3.bf16.msra.mxu1 %v586_v16 }
  0x4f   :  { %517 = vmatprep.subr.bf16.mxu0 %v714_v0  ;;  %537 = vmatprep.subr.bf16.mxu1 %v714_v0 }
  0x52   :  { %518 = vmatpush3.bf16.msra.mxu0 %v579_v13  ;;  %538 = vmatpush3.bf16.msra.mxu1 %v587_v17 }
  0x53   :  { %543 = vmatprep.subr.bf16.mxu0 %v714_v0 }
  0x55   :  { %520 = vmatmul.mubr.bf16.vlgmr.msra.gmra.mxu0 %v81_v15 }
  0x56   :  { %559 = vmatprep.mubr.msk.bf16.mxu0 %vm715_vm0, %v714_v0  ;;  %544 = vmatpush3.bf16.msra.mxu0 %v588_v18 }
  0x57   :  { %545 = vmatprep.subr.bf16.mxu0 %v714_v0 }
  0x5a   :  { %546 = vmatpush3.bf16.msra.mxu0 %v589_v19 }
  0x5b   :  { %547 = vmatprep.subr.bf16.mxu0 %v714_v0 }
  0x5e   :  { %548 = vmatpush3.bf16.msra.mxu0 %v590_v20 }
  0x5f   :  { %549 = vmatprep.subr.bf16.mxu0 %v714_v0 }
  0x62   :  { %550 = vmatpush3.bf16.msra.mxu0 %v591_v21 }
  0x63   :  { %551 = vmatprep.subr.bf16.mxu0 %v714_v0 }
  0x66   :  { %552 = vmatpush3.bf16.msra.mxu0 %v592_v22 }
  0x67   :  { %553 = vmatprep.subr.bf16.mxu0 %v714_v0 }
  0x6a   :  { %554 = vmatpush3.bf16.msra.mxu0 %v593_v23 }
  0x6b   :  { %555 = vmatprep.subr.bf16.mxu0 %v714_v0 }
  0x6e   :  { %556 = vmatpush3.bf16.msra.mxu0 %v594_v33 }
  0x6f   :  { %557 = vmatprep.subr.bf16.mxu0 %v714_v0 }
  0x72   :  { %558 = vmatpush3.bf16.msra.mxu0 %v595_v34 }
 0x115   :  { %v187_v25 = vpop.f32.mrf.mxu0 }
 0x116   :  { %v188_v26 = vadd.f32 %v449_v24, %v187_v25 }
 0x117   :  { %v521_v27 = vpop.f32.mrf.mxu0 }
 0x118   :  { %vm193_vm1 = vcmp.gt.f32.partialorder %v188_v26, 0.0  ;;  %v194_v28 = vmul.f32 0.2, %v188_v26 }
 0x119   :  { %v190_v29 = vpop.f32.mrf.mxu0 }
 0x11a   :  { %v195_v30 = vsel %vm193_vm1, %v188_v26, %v194_v28 }
 0x11b   :  { %v522_v31 = vpop.f32.mrf.mxu0  ;;  %v196_v32 = vpack.c.bf16 %v195_v30, %v195_v30 }
 0x11d   :  { %540 = vmatmul.mubr.bf16.vlgmr.msra.gmra.mxu1 %v196_v32 }
 0x1dd   :  { %v302_v36 = vpop.f32.mrf.mxu1 }
 0x1de   :  { %v303_v37 = vadd.f32 %v458_v35, %v302_v36 }
 0x1df   :  { %v541_v38 = vpop.f32.mrf.mxu1 }
 0x1e0   :  { %vm308_vm2 = vcmp.gt.f32.partialorder %v303_v37, 0.0  ;;  %v309_v39 = vmul.f32 0.2, %v303_v37 }
 0x1e1   :  { %v305_v40 = vpop.f32.mrf.mxu1 }
 0x1e2   :  { %v310_v41 = vsel %vm308_vm2, %v303_v37, %v309_v39 }
 0x1e3   :  { %v311_v42 = vpack.c.bf16 %v310_v41, %v310_v41  ;;  %v542_v43 = vpop.f32.mrf.mxu1 }
 0x1e5   :  { %560 = vmatmul.mubr.bf16.vlgmr.msra.gmra.mxu0 %v311_v42 }
 0x2a5   :  { %v417_v45 = vpop.f32.mrf.mxu0 }
 0x2a6   :  { %v418_v46 = vadd.f32 %v467_v44, %v417_v45 }
 0x2a7   :  { %v561_v47 = vpop.f32.mrf.mxu0 }
 0x2a8   :  { %vm423_vm3 = vcmp.gt.f32.partialorder %v418_v46, 0.0  ;;  %v424_v48 = vmul.f32 0.2, %v418_v46 }
 0x2a9   :  { %v420_v49 = vpop.f32.mrf.mxu0 }
 0x2aa   :  { %v425_v50 = vsel %vm423_vm3, %v418_v46, %v424_v48 }
 0x2ab   :  { %v426_v51 = vsub.f32 0.0, %v425_v50  ;;  %v562_v52 = vpop.f32.mrf.mxu0 }
 0x2ad   :  { %v427_v53 = vmul.f32 1.442695, %v426_v51 }
 0x2af   :  { %596 = vpow2.f32 %v427_v53 }
 0x2bc   :  { %v597_v54 = vpop.eup %596 }
 0x2bd   :  { %v429_v55 = vadd.f32 1.0, %v597_v54 }
 0x2bf   :  { %598 = vrcp.f32 %v429_v55 }
 0x2cc   :  { %v599_v56 = vpop.eup %598 }
 0x2cd   :  { %431 = vst [vmem:[#allocation10] sm:$0xff] %v599_v56 }
 0x2ce   :  { %691 = shalt.err (!%p688_p10)
}
 0x2cf   :  { %441 = dma.vmem_to_hbm [thread:$0]  %s439_s24, 128, %s827_s7, [#allocation4]  }
 0x2d0   :  { %706 = dma.done.wait [#allocation4], 128  }
 0x2d1   :  { %707 = vsyncadd [#allocation4], 4294967168 }
 0x2d2   :  { %445 = vsyncpa [#allocation3], 1 }
 0x2d3   :  { %446 = vsyncpa [#allocation6], 1 }
 0x2d4   :  { %447 = vsyncpa [#allocation9], 1 }
 0x2d5   :  { %448 = vsyncpa [#allocation4], 1 }

</bundles_post_ra>
